<compile_context>
chip_gen: v7x
topology: tpu7x:2x2x1
jax: 0.10.0
libtpu: 0.0.40
codegen_flags: <defaults>
</compile_context>

<pallas_src>
import jax
import jax.numpy as jnp
from jax.experimental import pallas as pl
from jax.experimental.pallas import tpu as pltpu


def _round_up(x: int, m: int) -> int:
    return (x + m - 1) // m * m


def trainer_eval_kernel(logits_ref, probs_ref, pred_ref):
    """Fused softmax + argmax for one (tile_n, C) batch tile.

    logits_ref : (tn, C) any float — model outputs ("pred" in Trainer.evaluate)
    probs_ref  : (tn, C) probs_dtype — softmax(logits, axis=1)        (predict_proba)
    pred_ref   : (1, 1, tn) int32   — argmax(logits, axis=1), lane-dense (predict / y_hat)
    """
    logits = logits_ref[...].astype(jnp.float32)                  # per-tile upcast (VPU)
    tn, c = logits.shape

    # --- softmax(axis=1), numerically stable (predict_proba path) ---
    m = jnp.max(logits, axis=1, keepdims=True)                    # [tn, 1]  (XLU)
    e = jnp.exp(logits - m)                                       # [tn, C]  (EUP)
    denom = jnp.sum(e, axis=1, keepdims=True)                     # [tn, 1]  (XLU)
    inv = pl.reciprocal(denom, approx=True)                       # EUP vrcp (free slot)
    inv = inv * (2.0 - denom * inv)                               # 1 Newton step -> f32 exact
    probs_ref[...] = (e * inv).astype(probs_ref.dtype)

    # --- argmax(axis=1), first-occurrence tie-break like torch.max(pred, 1)[1] ---
    col = jax.lax.broadcasted_iota(jnp.int32, (tn, c), 1)         # [tn, C]
    is_max = logits == m
    y_hat = jnp.min(jnp.where(is_max, col, c), axis=1).astype(jnp.int32)   # [tn]
    pred_ref[...] = y_hat.reshape(1, 1, tn)                       # lane-dense row write


def trainer_eval(logits: jax.Array, targets: jax.Array, *,
                 tile_n: int = 4096, probs_dtype=jnp.bfloat16):
    """softmax probabilities, argmax predictions and correct-count for a logits batch.

    logits : (N, C) float — model outputs (native dtype; upcast happens in-kernel)
    targets: (N,)   int   — class labels
    returns (probs [N, C] probs_dtype, y_hat [N] int32, correct () int32)
    """
    n, c = logits.shape

    # ---- generation-aware VMEM budget -------------------------------------------------
    try:
        vmem_physical = int(pltpu.get_tpu_info().vmem_capacity_bytes)
    except Exception:
        vmem_physical = 64 * 1024 * 1024            # conservative fallback (v7x-sized)
    vmem_limit = int(min(vmem_physical // 2, 64 * 1024 * 1024))   # scoped limit
    vmem_budget = vmem_limit * 3 // 4                              # resident sizing budget

    # ---- tile sizing: include lane padding, intermediates and the pred buffer ---------
    c_pad = _round_up(c, 128)                        # VMEM lane-pads the class axis
    in_bytes = jnp.dtype(logits.dtype).itemsize
    out_bytes = jnp.dtype(probs_dtype).itemsize
    per_row_bytes = (2 * c_pad * (in_bytes + out_bytes)   # double-buffered logits + probs
                     + 3 * c_pad * 4                      # f32 intermediates (upcast/exp/iota)
                     + 128)                               # lane-dense pred + narrow scratch
    max_rows = max(8, (vmem_budget // per_row_bytes) // 8 * 8)

    tile_n = max(8, min(tile_n, max(8, n // 8 * 8), max_rows))
    if tile_n >= 128:
        tile_n = tile_n // 128 * 128                 # keep pred writes lane-dense
    else:
        tile_n = tile_n // 8 * 8

    num_tiles = pl.cdiv(n, tile_n)                   # ragged last tile handled by Pallas

    probs, pred3 = pl.pallas_call(
        trainer_eval_kernel,
        grid=(num_tiles,),
        in_specs=[
            pl.BlockSpec((tile_n, c), lambda i: (i, 0)),
        ],
        out_specs=(
            pl.BlockSpec((tile_n, c), lambda i: (i, 0)),
            pl.BlockSpec((1, 1, tile_n), lambda i: (i, 0, 0)),
        ),
        out_shape=(
            jax.ShapeDtypeStruct((n, c), probs_dtype),
            jax.ShapeDtypeStruct((num_tiles, 1, tile_n), jnp.int32),
        ),
        compiler_params=pltpu.CompilerParams(
            dimension_semantics=("parallel",),       # no cross-tile state -> megacore OK
            vmem_limit_bytes=vmem_limit,
        ),
    )(logits)

    y_hat = pred3.reshape(num_tiles * tile_n)[:n]
    correct = jnp.sum((y_hat == targets.astype(jnp.int32)).astype(jnp.int32))
    return probs, y_hat, correct


if __name__ == "__main__":
    # Small deterministic example consistent with Trainer's evaluate/predict usage:
    # a batch of N=20 examples (not a multiple of the tile -> exercises the ragged tile
    # path, no padding copies) with C=16 classes.
    key = jax.random.PRNGKey(0)
    k_logits, k_targets = jax.random.split(key)
    N, C = 20, 16
    logits = jax.random.normal(k_logits, (N, C), dtype=jnp.float32)
    targets = jax.random.randint(k_targets, (N,), 0, C, dtype=jnp.int32)

    probs, y_hat, correct = trainer_eval(logits, targets)
    jax.block_until_ready((probs, y_hat, correct))

    # sanity checks vs pure-JAX reference
    ref_probs = jax.nn.softmax(logits, axis=1)
    ref_pred = jnp.argmax(logits, axis=1).astype(jnp.int32)
    assert probs.shape == (N, C) and y_hat.shape == (N,)
    assert bool(jnp.all(y_hat == ref_pred)), "argmax mismatch"
    assert int(correct) == int(jnp.sum(ref_pred == targets)), "correct-count mismatch"
    p32 = probs.astype(jnp.float32)
    assert bool(jnp.all(jnp.abs(jnp.sum(p32, axis=1) - 1.0) < 1e-2)), "softmax rows != 1"
    assert bool(jnp.all(jnp.abs(p32 - ref_probs) < 1e-2)), "softmax values mismatch"

    print("KERNEL_OK")
</pallas_src>

<mosaic_0001>
module attributes {stable_mosaic.version = 11 : i64} {
  func.func @trainer_eval_kernel(%arg0: i32, %arg1: memref<16x16xf32, #tpu.memory_space<vmem>>, %arg2: memref<16x16xbf16, #tpu.memory_space<vmem>>, %arg3: memref<1x1x16xi32, #tpu.memory_space<vmem>>) attributes {dimension_semantics = [#tpu.dimension_semantics<parallel>], iteration_bounds = array<i64: 2>, scalar_prefetch = 0 : i64, scratch_operands = 0 : i64, tpu.core_type = #tpu.core_type<tc>, window_params = [{transform_indices = @transform_0, window_bounds = array<i64: 16, 16>}, {transform_indices = @transform_1, window_bounds = array<i64: 16, 16>}, {transform_indices = @transform_2, window_bounds = array<i64: 1, 1, 16>}]} {
    %c0 = arith.constant 0 : index
    %c0_0 = arith.constant 0 : index
    %0 = vector.load %arg1[%c0, %c0_0] : memref<16x16xf32, #tpu.memory_space<vmem>>, vector<16x16xf32>
    %cst = arith.constant dense<0xFF800000> : vector<16xf32>
    %1 = vector.multi_reduction <maximumf>, %0, %cst [1] : vector<16x16xf32> to vector<16xf32>
    %2 = vector.shape_cast %1 : vector<16xf32> to vector<16x1xf32>
    %3 = vector.broadcast %2 : vector<16x1xf32> to vector<16x16xf32>
    %4 = arith.subf %0, %3 : vector<16x16xf32>
    %5 = math.exp %4 : vector<16x16xf32>
    %cst_1 = arith.constant dense<0.000000e+00> : vector<16xf32>
    %6 = vector.multi_reduction <add>, %5, %cst_1 [1] : vector<16x16xf32> to vector<16xf32>
    %7 = vector.shape_cast %6 : vector<16xf32> to vector<16x1xf32>
    %8 = tpu.reciprocal %7 {approx = true} : vector<16x1xf32> -> vector<16x1xf32>
    %9 = arith.mulf %7, %8 : vector<16x1xf32>
    %cst_2 = arith.constant 2.000000e+00 : f32
    %10 = vector.broadcast %cst_2 : f32 to vector<16x1xf32>
    %11 = arith.subf %10, %9 : vector<16x1xf32>
    %12 = arith.mulf %8, %11 : vector<16x1xf32>
    %13 = vector.broadcast %12 : vector<16x1xf32> to vector<16x16xf32>
    %14 = arith.mulf %5, %13 : vector<16x16xf32>
    %15 = arith.truncf %14 : vector<16x16xf32> to vector<16x16xbf16>
    %c0_3 = arith.constant 0 : index
    %c0_4 = arith.constant 0 : index
    %16 = vector.load %arg2[%c0_3, %c0_4] : memref<16x16xbf16, #tpu.memory_space<vmem>>, vector<16x16xbf16>
    tpu.vector_store %arg2[%c0_3, %c0_4], %15 {strides = array<i32>} : memref<16x16xbf16, #tpu.memory_space<vmem>>, vector<16x16xbf16>,
    %17 = tpu.iota {dimensions = array<i32: 1>} : vector<16x16xi32>
    %18 = vector.broadcast %2 : vector<16x1xf32> to vector<16x16xf32>
    %19 = arith.cmpf oeq, %0, %18 : vector<16x16xf32>
    %c16_i32 = arith.constant 16 : i32
    %20 = vector.broadcast %c16_i32 : i32 to vector<16x16xi32>
    %21 = arith.select %19, %17, %20 : vector<16x16xi1>, vector<16x16xi32>
    %cst_5 = arith.constant dense<2147483647> : vector<16xi32>
    %22 = vector.multi_reduction <minsi>, %21, %cst_5 [1] : vector<16x16xi32> to vector<16xi32>
    %23 = vector.shape_cast %22 : vector<16xi32> to vector<1x1x16xi32>
    %c0_6 = arith.constant 0 : index
    %c0_7 = arith.constant 0 : index
    %c0_8 = arith.constant 0 : index
    %24 = vector.load %arg3[%c0_6, %c0_7, %c0_8] : memref<1x1x16xi32, #tpu.memory_space<vmem>>, vector<1x1x16xi32>
    tpu.vector_store %arg3[%c0_6, %c0_7, %c0_8], %23 {strides = array<i32>} : memref<1x1x16xi32, #tpu.memory_space<vmem>>, vector<1x1x16xi32>,
    return
  }
  func.func @transform_0(%arg0: i32) -> (i32, i32) {
    %c0_i32 = arith.constant 0 : i32
    %c0_i32_0 = arith.constant 0 : i32
    return %arg0, %c0_i32 : i32, i32
  }
  func.func @transform_1(%arg0: i32) -> (i32, i32) {
    %c0_i32 = arith.constant 0 : i32
    %c0_i32_0 = arith.constant 0 : i32
    return %arg0, %c0_i32 : i32, i32
  }
  func.func @transform_2(%arg0: i32) -> (i32, i32, i32) {
    %c0_i32 = arith.constant 0 : i32
    %c0_i32_0 = arith.constant 0 : i32
    %c0_i32_1 = arith.constant 0 : i32
    return %arg0, %c0_i32, %c0_i32_0 : i32, i32, i32
  }
}

</mosaic_0001>

<bundles_post_ra>
// kernel: tpu_custom_call.1
= control target key start
LH: loop header
LB: loop body
LE: loop exit
PB: predicated region body
PF: predicated region fallthrough
CT: control target
= control target key end

     0   :  { %8 = vsyncpa [#allocation4], 0  ;;  %s964_s0 = inlined_call_operand.vmem [shape: f32[20,16], index: 0, kind: input, shape index: {}]   ;;  %s965_s1 = inlined_call_operand.vmem [shape: bf16[20,16], index: 1, kind: output, shape index: {0}]   ;;  %s966_s2 = inlined_call_operand.hbm [shape: s32[2,1,16], index: 2, kind: output, shape index: {1}]  }
   0x1   :  { %10 = vsyncpa [#allocation4 + $0x1], 0  ;;  %s816_s9 = smov 0   ;;  %s818_s10 = smov 0  }
   0x2   :  { %s820_s11 = smov 0   ;;  %s822_s12 = smov 0  }
   0x3 LB: > { %s837_s13 = sadd.s32 4294967295, %s766_s12   ;;  %s529_s14 = sadd.s32 4294967294, %s766_s12   ;;  %s766_s12 = sphi %s822_s12, %s972_s12   ;;  %s762_s11 = sphi %s820_s11, %s971_s11   ;;  %s758_s10 = sphi %s818_s10, %s970_s10   ;;  %s754_s9 = sphi %s816_s9, %s969_s9  }
   0x4   : > { %s841_s15 = sadd.s32 1, %s766_s12   ;;  %s49_s16 = sadd.s32 1, %s762_s11 }
   0x5   : > { %s46_s17 = ssub.s32 %s766_s12, %s841_s15  ;;  %p59_p0 = scmp.ne.s32.totalorder %s762_s11, %s758_s10 }
   0x6   : > { %p47_p1 = scmp.eq.s32.totalorder %s46_s17, 0  ;;  %p60_p2 = scmp.eq.s32.totalorder %s837_s13, 1 }
   0x7   : > { %p91_p3 = scmp.ne.s32.totalorder %s758_s10, %s754_s9  ;;  %p92_p4 = scmp.eq.s32.totalorder %s529_s14, 1 }
   0x8   : > { %s852_s18 = scalar_select %p47_p1, %s762_s11, %s49_s16  }
   0x9   : > { %p854_p5 = por %p60_p2, %p59_p0  ;;  %p858_p6 = por %p92_p4, %p91_p3 }
   0xa   : > { %p532_p7 = scmp.ge.s32.totalorder %s766_s12, 1  ;;  %p127_p8 = scmp.lt.s32.totalorder %s766_s12, 3 }
   0xc   : > { %p128_p9 = pnand %p532_p7, %p127_p8 }
   0xd   : > { %s865_s21 = sshll.u32 (!%p128_p9), %s837_s13, 1  ;;  %vm177_vm0 = vcmask (!%p128_p9), 130048   ;;  %v217_v4 = vlaneseq (!%p128_p9)  ;;  %s883_s27 = sand.u32 (!%p128_p9), 1, %s758_s10   ;;  %vm214_vm5 = vcmask (!%p128_p9), 125952   ;;  %vm262_vm6 = vcmask (!%p128_p9), 130112  }
   0xe   : > { %131 = sbr.rel (%p128_p9) target bundleno = 547 (0x223), region = 24  ;;  %p161_p10 = scmp.lt.s32.totalorder (!%p128_p9), %s865_s21, 2  ;;  %vm264_vm7 = vcmask (!%p128_p9), 122880  }
   0xf   : > { %v874_v5 = vand.u32 (!%p128_p9), 127, %v217_v4  ;;  %s533_s28 = sshll.u32 (!%p128_p9), %s883_s27, 3  ;;  %v254_v47 = vshrl.u32 (!%p128_p9), %v217_v4, 7  ;;  %s155_s30 = scalar_lea.vmem (!%p128_p9), [#allocation3], %s883_s27 }
  0x10   : > { %s886_s29 = scalar_lea.vmem (!%p128_p9), [#allocation2], %s533_s28   ;;  %s271_s3 = scalar_lea.sflag (!%p128_p9), [#allocation4], %s883_s27 }
  0x11   : > { %v257_v51 = vadd.s32 (!%p128_p9), 4294967288, %v874_v5  ;;  %v255_v53 = vsub.s32 (!%p128_p9), %v874_v5, %v254_v47 }
  0x13   : > { %v260_v57 = vsub.s32 (!%p128_p9), %v257_v51, %v254_v47 }
  0x15   : > { %s162_s22 = scalar_select %p161_p10, %s865_s21, 2 }
  0x16   : > { %s278_s4 = ssub.s32 (%p854_p5), 3, %s865_s21  ;;  %s558_s5 = sshll.u32 (%p854_p5), %s837_s13, 3 }
  0x17   : > { %s535_s23 = sshll.u32 %s162_s22, 3  ;;  %p279_p11 = scmp.lt.s32.totalorder (%p854_p5), %s278_s4, 2 }
  0x18   : > { %s164_s26 = scalar_lea.vmem %s964_s0, %s535_s23  ;;  %s903_s8 = scalar_lea.vmem (%p854_p5), %s965_s1, %s558_s5  }
  0x19   : > { %v175_v0 = vld [vmem:[%s164_s26] sm:$0xff]  ;;  %v176_v1 = vld [vmem:[%s164_s26 + $0x8] sm:$0xff] }
  0x1a   : > { %v178_v2 = vsel %vm177_vm0, %v175_v0, -inf  ;;  %v181_v3 = vsel %vm177_vm0, %v176_v1, -inf }
  0x1b   : > { %179 = vmax.xlane.f32.xlu0 %v178_v2 }
  0x1f   : > { %182 = vmax.xlane.f32.xlu0 %v181_v3 }
  0xa8   : > { %v180_v6 = vpop.xlane.xlu0 %179 }
  0xa9   : > { %v184_v7 = vsub.f32 %v175_v0, %v180_v6  ;;  %vm219_vm1 = vcmp.eq.f32.partialorder %v175_v0, %v180_v6 }
  0xaa   : > { %v221_v8 = vsel %vm219_vm1, %v874_v5, 16 }
  0xab   : > { %v186_v9 = vmul.f32 1.442695, %v184_v7  ;;  %v223_v10 = vsel %vm177_vm0, %v221_v8, 2147483647 }
  0xac   : > { %v183_v11 = vpop.xlane.xlu0 %182  ;;  %v225_v12 = vshra.s32 %v223_v10, 16  ;;  %v224_v24 = vand.u32 65535, %v223_v10 }
  0xad   : > { %664 = vpow2.f32 %v186_v9  ;;  %v185_v13 = vsub.f32 %v176_v1, %v183_v11  ;;  %vm220_vm2 = vcmp.eq.f32.partialorder %v176_v1, %v183_v11 }
  0xae   : > { %v222_v14 = vsel %vm220_vm2, %v874_v5, 16  ;;  %v227_v15 = vcvt.s32.f32 %v225_v12  ;;  %v226_v26 = vcvt.s32.f32 %v224_v24 }
  0xaf   : > { %v188_v16 = vmul.f32 1.442695, %v185_v13  ;;  %v238_v17 = vsel %vm177_vm0, %v222_v14, 2147483647 }
  0xb0   : > { %228 = vmin.xlane.f32.xlu1 %v227_v15  ;;  %v240_v18 = vshra.s32 %v238_v17, 16  ;;  %v239_v27 = vand.u32 65535, %v238_v17 }
  0xb1   : > { %666 = vpow2.f32 %v188_v16 }
  0xb2   : > { %v242_v19 = vcvt.s32.f32 %v240_v18  ;;  %v241_v30 = vcvt.s32.f32 %v239_v27 }
  0xb4   : > { %243 = vmin.xlane.f32.xlu1 %v242_v19 }
  0xb7   : > { %v665_v20 = vpop.eup %664 }
  0xb8   : > { %v190_v21 = vsel %vm177_vm0, %v665_v20, 0.0 }
  0xb9   : > { %191 = vadd.xlane.f32.xlu0 %v190_v21 }
  0xbb   : > { %v667_v22 = vpop.eup %666 }
  0xbc   : > { %v193_v23 = vsel %vm177_vm0, %v667_v22, 0.0 }
  0xbd   : > { %194 = vadd.xlane.f32.xlu1 %v193_v23 }
 0x13d   : > { %v229_v25 = vpop.xlane.xlu1 %228 }
 0x13e   : > { %vm230_vm3 = vcmp.eq.f32.partialorder %v227_v15, %v229_v25  ;;  %v235_v46 = vcvt.f32.s32 %v229_v25 }
 0x13f   : > { %v231_v28 = vsel %vm230_vm3, %v226_v26, inf }
 0x140   : > { %232 = vmin.xlane.f32.xlu0 %v231_v28  ;;  %v236_v52 = vshll.u32 %v235_v46, 16 }
 0x141   : > { %v244_v29 = vpop.xlane.xlu1 %243 }
 0x142   : > { %vm245_vm4 = vcmp.eq.f32.partialorder %v242_v19, %v244_v29  ;;  %v250_v49 = vcvt.f32.s32 %v244_v29 }
 0x143   : > { %v246_v31 = vsel %vm245_vm4, %v241_v30, inf }
 0x144   : > { %247 = vmin.xlane.f32.xlu1 %v246_v31  ;;  %v251_v55 = vshll.u32 %v250_v49, 16 }
 0x146   : > { %v192_v32 = vpop.xlane.xlu0 %191 }
 0x147   : > { %668 = vrcp.f32 %v192_v32 }
 0x14a   : > { %v195_v33 = vpop.xlane.xlu1 %194 }
 0x14b   : > { %670 = vrcp.f32 %v195_v33 }
 0x151   : > { %v669_v34 = vpop.eup %668 }
 0x152   : > { %v198_v35 = vmul.f32 %v669_v34, %v192_v32 }
 0x154   : > { %v200_v36 = vsub.f32 2.0, %v198_v35 }
 0x155   : > { %v671_v37 = vpop.eup %670 }
 0x156   : > { %v202_v38 = vmul.f32 %v669_v34, %v200_v36  ;;  %v199_v39 = vmul.f32 %v671_v37, %v195_v33 }
 0x158   : > { %v204_v40 = vmul.f32 %v665_v20, %v202_v38  ;;  %v201_v41 = vsub.f32 2.0, %v199_v39 }
 0x15a   : > { %v556_v42 = vpack.c.bf16 %v204_v40, %v204_v40  ;;  %v203_v43 = vmul.f32 %v671_v37, %v201_v41 }
 0x15c   : > { %215 = vst.msk [vmem:[%s886_s29] sm:$0xf] %vm214_vm5, %v556_v42  ;;  %v205_v44 = vmul.f32 %v667_v22, %v203_v43 }
 0x15e   : > { %v557_v45 = vpack.c.bf16 %v205_v44, %v205_v44 }
 0x160   : > { %216 = vst.msk [vmem:[%s886_s29 + $0x4] sm:$0xf] %vm214_vm5, %v557_v45 }
 0x1cd   : > { %v233_v48 = vpop.xlane.xlu0 %232 }
 0x1ce   : > { %v234_v50 = vcvt.f32.s32 %v233_v48 }
 0x1d0   : > { %v237_v56 = vadd.s32 %v236_v52, %v234_v50 }
 0x1d1   : > { %v248_v54 = vpop.xlane.xlu1 %247 }
 0x1d2   : > { %v249_v58 = vcvt.f32.s32 %v248_v54  ;;  %v256_v60 = vrot.slane %v237_v56, %v255_v53 }
 0x1d3   : > { %276 = sbr.rel (!%p854_p5) target bundleno = 523 (0x20b), region = 28 }
 0x1d4   : > { %v252_v59 = vadd.s32 %v251_v55, %v249_v58 }
 0x1d6   : > { %v261_v61 = vrot.slane %v252_v59, %v260_v57 }
 0x1d8   : > { %v263_v62 = vsel %vm262_vm6, %v261_v61, %v256_v60 }
 0x1d9   : > { %265 = vst.msk [vmem:[%s155_s30] sm:$0x1] %vm264_vm7, %v263_v62 }
 0x1da   : > { %s974_s4 = smov (!%p279_p11, %s278_s4), 2 }
 0x1db   : > { %s540_s14 = sshll.u32 %s974_s4, 6 }
 0x1dc   : > { %p543_p12 = scmp.eq.s32.totalorder %s540_s14, 0 }
 0x1dd   : > { %s909_s16 = sshrl.u32 (!%p543_p12), %s974_s4, 1 }
 0x1de   : > { %287 = sbr.rel (%p543_p12) target bundleno = 523 (0x20b), region = 32  ;;  %p544_p13 = scmp.le.s32.totalorder (!%p543_p12), %s909_s16, 0 }
 0x1e5   : > { %476 = sbr.rel (%p544_p13) target bundleno = 502 (0x1f6), region = 121  ;;  %s768_s17 = smov (!%p544_p13), %s903_s8  }
 0x1e6   : > { %s772_s21 = smov (!%p544_p13), %s886_s29   ;;  %s776_s22 = smov (!%p544_p13), 0  }
 0x1e7   : > { %s780_s23 = smov (!%p544_p13), 0  }
 0x1ec LB: >> { %v303_v63 = vld [vmem:[%s774_s21] sm:$0xf]  ;;  %v305_v0 = vld [vmem:[%s774_s21 + $0x4] sm:$0xf]  ;;  %s307_s24 = sadd.s32 1, %s778_s22  ;;  %s297_s23 = sadd.s32 1, %s782_s23   ;;  %s782_s23 = sphi %s780_s23, %s297_s23   ;;  %s778_s22 = sphi %s776_s22, %s777_s22   ;;  %s774_s21 = sphi %s772_s21, %s312_s21   ;;  %s770_s17 = sphi %s768_s17, %s313_s17  }
 0x1ed   : >> { %304 = vst [vmem:[%s770_s17] sm:$0xf] %v303_v63  ;;  %306 = vst [vmem:[%s770_s17 + $0x4] sm:$0xf] %v305_v0  ;;  %p308_p0 = scmp.ge.s32.totalorder %s307_s24, %s909_s16  ;;  %p296_p1 = scmp.ge.s32.totalorder %s297_s23, %s909_s16 }
 0x1ef   : >> { %s976_s24 = smov (%p308_p0, %s307_s24), 0  ;;  %299 = sbr.rel (!%p296_p1) target bundleno = 492 (0x1ec), region = 127 }
 0x1f0   : >> { %s545_s25 = sshll.u32 %s976_s24, 3  ;;  %s777_s22 = smov %s976_s24  }
 0x1f1   : >> { %s312_s21 = scalar_lea.vmem %s886_s29, %s545_s25 [#allocation2]   ;;  %s313_s17 = scalar_lea.vmem %s903_s8, %s545_s25  }
 0x1f6 PF: > { %s919_s26 = sand.u32 1, %s974_s4   ;;  %s559_s28 = sshll.u32 %s909_s16, 3 }
 0x1f7   : > { %s318_s5 = scalar_lea.vmem %s886_s29, %s559_s28 [#allocation2]   ;;  %s320_s6 = scalar_lea.vmem %s903_s8, %s559_s28  }
 0x1f8   : > { %p550_p2 = scmp.le.s32.totalorder %s919_s26, 0 }
 0x1f9   : > { %s784_s7 = smov (!%p550_p2), %s320_s6   ;;  %s788_s14 = smov (!%p550_p2), %s318_s5  }
 0x1fa   : > { %490 = sbr.rel (%p550_p2) target bundleno = 523 (0x20b), region = 132  ;;  %s792_s17 = smov (!%p550_p2), 0  }
 0x1fb   : > { %s796_s21 = smov (!%p550_p2), 0  }
 0x201 LB: >> { %v330_v1 = vld [vmem:[%s790_s14] sm:$0xf]  ;;  %s332_s4 = sadd.s32 1, %s794_s17  ;;  %s324_s21 = sadd.s32 1, %s798_s21   ;;  %s798_s21 = sphi %s796_s21, %s324_s21   ;;  %s794_s17 = sphi %s792_s17, %s793_s17   ;;  %s790_s14 = sphi %s788_s14, %s337_s14   ;;  %s786_s7 = sphi %s784_s7, %s338_s7  }
 0x202   : >> { %331 = vst [vmem:[%s786_s7] sm:$0xf] %v330_v1  ;;  %p333_p3 = scmp.ge.s32.totalorder %s332_s4, %s919_s26  ;;  %p323_p4 = scmp.ge.s32.totalorder %s324_s21, %s919_s26 }
 0x204   : >> { %s978_s4 = smov (%p333_p3, %s332_s4), 0  ;;  %326 = sbr.rel (!%p323_p4) target bundleno = 513 (0x201), region = 138 }
 0x205   : >> { %s551_s29 = sshll.u32 %s978_s4, 2  ;;  %s793_s17 = smov %s978_s4  }
 0x206   : >> { %s337_s14 = scalar_lea.vmem %s318_s5, %s551_s29 [#allocation2]   ;;  %s338_s7 = scalar_lea.vmem %s320_s6, %s551_s29  }
 0x20b PF: > { %s553_s8 = sshll.u32 %s837_s13, 4  ;;  %s398_s16 = sshll.u32 %s155_s30, 4  ;;  %s399_s16 = int_to_ptr.vmem [resolvable:$true] %s398_s16 }
 0x20c   : > { %s396_s24 = scalar_lea.hbm %s966_s2, %s553_s8  ;;  %s672_s25 = scalar_lea.vmem %s399_s16, 16 }
 0x20d   : > { %p673_p7 = scmp.ne.s32.totalorder %s399_s16, %s672_s25  ;;  %s800_s28 = smov [#allocation3]  }
 0x20e   : > { %s676_s26 = sshll.u32 %s800_s28, 4  ;;  %s677_s26 = int_to_ptr.vmem [resolvable:$false] %s676_s26 }
 0x20f   : > { %p674_p8 = pnand %p673_p7, %p854_p5  ;;  %s678_s5 = scalar_lea.vmem %s677_s26, 32 }
 0x210   : > { %p679_p10 = scmp.lt.s32.totalorder %s399_s16, %s677_s26  ;;  %p680_p11 = scmp.lt.s32.totalorder %s678_s5, %s672_s25 }
 0x211   : > { %p675_p9 = pneg %p674_p8 }
 0x212   : > { %p681_p12 = por %p680_p11, %p679_p10 }
 0x214   : > { %p682_p13 = pnand %p681_p12, %p675_p9 }
 0x216   : > { %685 = shalt.err (!%p682_p13)
}
 0x217   : > { %s686_s13 = scalar_lea.hbm %s396_s24, 16  ;;  %s690_s7 = scalar_lea.hbm %s966_s2, 32 }
 0x218   : > { %p687_p0 = scmp.ne.s32.totalorder %s396_s24, %s686_s13  ;;  %p691_p3 = scmp.lt.u32.totalorder %s396_s24, %s966_s2 }
 0x219   : > { %p692_p4 = scmp.lt.u32.totalorder %s690_s7, %s686_s13  ;;  %p694_p8 = scmp.lt.u32.totalorder %s686_s13, %s396_s24 }
 0x21a   : > { %p688_p1 = pnand %p687_p0, %p854_p5 }
 0x21b   : > { %p693_p7 = por %p692_p4, %p691_p3 }
 0x21c   : > { %p689_p2 = pneg %p688_p1 }
 0x21d   : > { %p695_p10 = por %p694_p8, %p693_p7 }
 0x21f   : > { %p696_p9 = pnand %p695_p10, %p689_p2 }
 0x221   : > { %699 = shalt.err (!%p696_p9)
}
 0x222   : > { %561 = dma.vmem_to_hbm [thread:$0]  (%p854_p5), %s399_s16, 16, %s396_s24, %s271_s3  }
 0x223 PF: > { %p567_p11 = scmp.ge.s32.totalorder %s766_s12, 2  ;;  %s417_s21 = sand.u32 1, %s754_s9  }
 0x224   : > { %s418_s4 = scalar_lea.sflag [#allocation4], %s417_s21 }
 0x225   : > { %p564_p12 = pnand %p567_p11, %p858_p6 }
 0x227   : > { %749 = dma.done.wait (!%p564_p12), %s418_s4, 16  }
 0x228   : > { %751 = vsyncadd (!%p564_p12), %s418_s4, 4294967280  ;;  %p13_p13 = scmp.ge.s32.totalorder %s841_s15, 4   ;;  %s969_s9 = smov %s758_s10 }
 0x229   : > { %s970_s10 = smov %s762_s11  ;;  %s971_s11 = smov %s852_s18 }
 0x22a   : > { %s972_s12 = smov %s841_s15  ;;  %15 = sbr.rel (!%p13_p13) target bundleno = 3 (0x3), region = 149 }
 0x231   :  { %422 = vsyncpa [#allocation4], 1 }
 0x232   :  { %424 = vsyncpa [#allocation4 + $0x1], 1 }

</bundles_post_ra>
